<compile_context>
chip_gen: v7x
topology: tpu7x:2x2x1
jax: 0.10.0
libtpu: 0.0.40
codegen_flags: <defaults>
</compile_context>

<pallas_src>
import numpy as np
import jax
import jax.numpy as jnp
from jax.experimental import pallas as pl
from jax.experimental.pallas import tpu as pltpu


def _round_up(x, m):
    return (x + m - 1) // m * m


# ----------------------------------------------------------------------------
# Kernel: one (tm, tn) output tile, K-reduction over grid axis 2.
# ----------------------------------------------------------------------------
def _wnd_kernel(x_ref, w_ref, inv_ref, bias_ref, o_ref, acc_ref):
    k = pl.program_id(2)

    @pl.when(k == 0)
    def _init():
        acc_ref[...] = jnp.zeros_like(acc_ref)

    # MXU partial sum, f32 accumulation. Cast x to the streamed weight dtype
    # (no-op on the f32 path) so bf16 weights hit the fast MXU path.
    acc_ref[...] += jnp.dot(
        x_ref[...].astype(w_ref.dtype), w_ref[...],
        preferred_element_type=jnp.float32)

    @pl.when(k == pl.num_programs(2) - 1)
    def _finalize():
        # inv = scale / ||w_col||_2 was precomputed at init (full f32), so the
        # epilogue is a single broadcast multiply + bias add.
        o_ref[...] = (acc_ref[...] * inv_ref[...] + bias_ref[...]).astype(o_ref.dtype)


# ----------------------------------------------------------------------------
# Init-time parameter prep: concat / normalizer / cast / pad done ONCE.
# ----------------------------------------------------------------------------
def prepare_weight_norm_params(weights, scale, bias, param_keys, *,
                               weights_dtype=jnp.bfloat16, tn=512, tk=1024):
    """Builds the padded, cast weight matrix and the fused (1, N) epilogue
    vectors. Weights are parameters, so none of this is per-forward work."""
    w_cat = jnp.concatenate(
        [weights[k].astype(jnp.float32) for k in param_keys], axis=0)     # (K, N)
    K, N = w_cat.shape

    tn = min(tn, _round_up(N, 128))
    tk = min(tk, _round_up(K, 128))        # tk stays a multiple of 128 (512-granular when K allows)
    Np, Kp = _round_up(N, tn), _round_up(K, tk)

    # Fused normalizer from the ORIGINAL f32 weights: keeps full precision even
    # when streamed weights are bf16. Padded columns get inv=0, bias=0 -> out 0
    # (no NaNs in the padded region). All-zero real columns give inf, matching
    # the PyTorch reference.
    colsq = jnp.sum(w_cat * w_cat, axis=0, keepdims=True)                 # (1, N)
    inv = scale.reshape(1, N).astype(jnp.float32) / jnp.sqrt(colsq)

    w_p = jnp.pad(w_cat.astype(weights_dtype), ((0, Kp - K), (0, Np - N)))
    inv_p = jnp.pad(inv, ((0, 0), (0, Np - N)))
    b_p = jnp.pad(bias.reshape(1, N).astype(jnp.float32), ((0, 0), (0, Np - N)))

    return {"w": w_p, "inv": inv_p, "bias": b_p,
            "K": K, "N": N, "tk": tk, "tn": tn}


# ----------------------------------------------------------------------------
# Forward wrapper.
# ----------------------------------------------------------------------------
def weight_norm_dict_matmul(x_cat, params, *, tm=512):
    """Fused  (x_cat @ w) * inv + bias  via Pallas; params from
    prepare_weight_norm_params."""
    w_p, inv_p, b_p = params["w"], params["inv"], params["bias"]
    K, N, tk, tn = params["K"], params["N"], params["tk"], params["tn"]
    Kp, Np = w_p.shape
    B, Kx = x_cat.shape
    assert Kx == K, "x/w feature dims must match"

    x_elt = jnp.dtype(x_cat.dtype).itemsize
    w_elt = jnp.dtype(w_p.dtype).itemsize

    # Batch tile: cover B with minimal padding, capped by `tm` (weight HBM
    # traffic scales with ceil(B/tm), so tm is as large as VMEM allows).
    Bp8 = _round_up(B, 8)
    if Bp8 <= tm:
        tm = Bp8
    else:
        n_tiles = -(-Bp8 // tm)
        tm = _round_up(-(-Bp8 // n_tiles), 8)

    # VMEM guard: keep the double-buffered working set <= ~40 MiB so the same
    # tiling is safe on v7x (64 MiB physical) and v5e/v6e.
    def tile_bytes(tm_):
        return (2 * tm_ * tk * x_elt          # x tiles (double-buffered)
                + 2 * tk * tn * w_elt         # w tiles
                + 2 * tm_ * tn * 4            # output tiles
                + tm_ * tn * 4                # f32 accumulator scratch
                + 4 * tn * 4)                 # inv / bias tiles

    while tile_bytes(tm) > 40 * 2 ** 20 and tm > 8:
        tm = max(8, _round_up(tm // 2, 8))
    Bp = _round_up(B, tm)

    # v7x megacore: if the parallel grid would be a single tile, split N so
    # both TensorCores get work (neutral on 1-TC v5e/v6e).
    if (Bp // tm) * (Np // tn) < 2:
        for cand in (Np // 2, 256, 128):
            if cand >= 128 and cand % 128 == 0 and Np % cand == 0 and Np // cand >= 2:
                tn = cand
                break

    # Only the activation is padded per forward (zeros in padded K rows of w
    # make padded K cols of x harmless).
    x_p = jnp.pad(x_cat, ((0, Bp - B), (0, Kp - K)))

    grid = (Bp // tm, Np // tn, Kp // tk)
    vmem_limit = int(min(max(int(1.25 * tile_bytes(tm)), 16 * 2 ** 20),
                         48 * 2 ** 20))

    out = pl.pallas_call(
        _wnd_kernel,
        out_shape=jax.ShapeDtypeStruct((Bp, Np), jnp.float32),
        grid_spec=pltpu.PrefetchScalarGridSpec(
            num_scalar_prefetch=0,
            grid=grid,
            in_specs=[
                pl.BlockSpec((tm, tk), lambda i, j, k: (i, k)),   # x tile
                pl.BlockSpec((tk, tn), lambda i, j, k: (k, j)),   # w tile
                pl.BlockSpec((1, tn), lambda i, j, k: (0, j)),    # inv = scale/||w||
                pl.BlockSpec((1, tn), lambda i, j, k: (0, j)),    # bias
            ],
            out_specs=pl.BlockSpec((tm, tn), lambda i, j, k: (i, j)),
            scratch_shapes=[pltpu.VMEM((tm, tn), jnp.float32)],   # matmul acc
        ),
        compiler_params=pltpu.CompilerParams(
            dimension_semantics=("parallel", "parallel", "arbitrary"),
            vmem_limit_bytes=vmem_limit,
        ),
    )(x_p, w_p, inv_p, b_p)

    return out[:B, :N]


def weight_norm_dict_forward(state_dict, params, param_keys, **kw):
    batch = next(iter(state_dict.values())).shape[0]
    # TODO(synk): for large inputs, DMA per-key segments directly via a
    # PrefetchScalarGridSpec offset table instead of materializing x_cat.
    x_cat = jnp.concatenate(
        [state_dict[k].reshape(batch, -1) for k in param_keys], axis=1)
    return weight_norm_dict_matmul(x_cat, params, **kw)


def reference_forward(state_dict, weights, param_keys, scale, bias):
    batch = next(iter(state_dict.values())).shape[0]
    x = 0.0
    for k in param_keys:
        x = x + state_dict[k].reshape(batch, -1) @ weights[k]
    v_all = jnp.concatenate([weights[k] for k in param_keys], axis=0)
    x = x / jnp.linalg.norm(v_all, ord=2, axis=0)
    x = x * scale
    x = x + bias
    return x


if __name__ == "__main__":
    # Module config: in_dict maps key -> size (int or shape tuple), out_size
    in_dict = {"obs": 16, "img": (4, 8)}        # flattened sizes: 16 and 32
    out_size = 32
    batch = 2
    param_keys = list(in_dict.keys())

    key = jax.random.PRNGKey(0)
    k_w, k_s = jax.random.split(key)

    # Deterministic parameter init (Matrix: randn*0.05; Scale: 1/sqrt(N); Bias: 0)
    weights = {}
    wkeys = jax.random.split(k_w, len(param_keys))
    for kk, name in zip(wkeys, param_keys):
        size = in_dict[name]
        if not isinstance(size, int):
            size = int(np.prod(size))
        weights[name] = jax.random.normal(kk, (size, out_size), jnp.float32) * 0.05
    scale = jnp.full((1, out_size), 1.0 / out_size ** 0.5, jnp.float32)
    bias = jnp.zeros((1, out_size), jnp.float32)

    # Deterministic example inputs (state_dict)
    skeys = jax.random.split(k_s, len(param_keys))
    state_dict = {}
    for kk, name in zip(skeys, param_keys):
        size = in_dict[name]
        shape = (batch, size) if isinstance(size, int) else (batch,) + tuple(size)
        state_dict[name] = jax.random.normal(kk, shape, jnp.float32)

    ref = reference_forward(state_dict, weights, param_keys, scale, bias)

    # f32 weight path: tight-tolerance check of the fused semantics.
    params_f32 = prepare_weight_norm_params(
        weights, scale, bias, param_keys, weights_dtype=jnp.float32)
    out_f32 = jax.block_until_ready(
        weight_norm_dict_forward(state_dict, params_f32, param_keys))
    assert out_f32.shape == (batch, out_size)
    np.testing.assert_allclose(np.asarray(out_f32), np.asarray(ref),
                               rtol=1e-5, atol=1e-5)

    # Default bf16 weight-streaming path (halves weight DMA bytes; normalizer
    # still computed from f32 weights) — looser tolerance from the bf16 cast.
    params_bf16 = prepare_weight_norm_params(weights, scale, bias, param_keys)
    out_bf16 = jax.block_until_ready(
        weight_norm_dict_forward(state_dict, params_bf16, param_keys))
    assert out_bf16.shape == (batch, out_size)
    np.testing.assert_allclose(np.asarray(out_bf16), np.asarray(ref),
                               rtol=2e-2, atol=5e-3)

    print("KERNEL_OK")
</pallas_src>

<mosaic_0001>
module attributes {stable_mosaic.version = 11 : i64} {
  func.func @_wnd_kernel(%arg0: i32, %arg1: i32, %arg2: i32, %arg3: memref<8x128xf32, #tpu.memory_space<vmem>>, %arg4: memref<128x128xf32, #tpu.memory_space<vmem>>, %arg5: memref<1x128xf32, #tpu.memory_space<vmem>>, %arg6: memref<1x128xf32, #tpu.memory_space<vmem>>, %arg7: memref<8x128xf32, #tpu.memory_space<vmem>>, %arg8: memref<8x128xf32, #tpu.memory_space<vmem>>) attributes {dimension_semantics = [#tpu.dimension_semantics<parallel>, #tpu.dimension_semantics<parallel>, #tpu.dimension_semantics<arbitrary>], iteration_bounds = array<i64: 1, 1, 1>, scalar_prefetch = 0 : i64, scratch_operands = 1 : i64, tpu.core_type = #tpu.core_type<tc>, window_params = [{transform_indices = @transform_0, window_bounds = array<i64: 8, 128>}, {transform_indices = @transform_1, window_bounds = array<i64: 128, 128>}, {transform_indices = @transform_2, window_bounds = array<i64: 1, 128>}, {transform_indices = @transform_3, window_bounds = array<i64: 1, 128>}, {transform_indices = @transform_4, window_bounds = array<i64: 8, 128>}]} {
    %c0_i32 = arith.constant 0 : i32
    %0 = arith.cmpi eq, %arg2, %c0_i32 : i32
    %1 = arith.extui %0 : i1 to i32
    %c0_i32_0 = arith.constant 0 : i32
    %2 = arith.cmpi ne, %1, %c0_i32_0 : i32
    scf.if %2 {
      %cst_10 = arith.constant 0.000000e+00 : f32
      %12 = vector.broadcast %cst_10 : f32 to vector<8x128xf32>
      %c0_11 = arith.constant 0 : index
      %c0_12 = arith.constant 0 : index
      %13 = vector.load %arg8[%c0_11, %c0_12] : memref<8x128xf32, #tpu.memory_space<vmem>>, vector<8x128xf32>
      tpu.vector_store %arg8[%c0_11, %c0_12], %12 {strides = array<i32>} : memref<8x128xf32, #tpu.memory_space<vmem>>, vector<8x128xf32>,
    } else {
    }
    %c0 = arith.constant 0 : index
    %c0_1 = arith.constant 0 : index
    %3 = vector.load %arg8[%c0, %c0_1] : memref<8x128xf32, #tpu.memory_space<vmem>>, vector<8x128xf32>
    %c0_2 = arith.constant 0 : index
    %c0_3 = arith.constant 0 : index
    %4 = vector.load %arg3[%c0_2, %c0_3] : memref<8x128xf32, #tpu.memory_space<vmem>>, vector<8x128xf32>
    %c0_4 = arith.constant 0 : index
    %c0_5 = arith.constant 0 : index
    %5 = vector.load %arg4[%c0_4, %c0_5] : memref<128x128xf32, #tpu.memory_space<vmem>>, vector<128x128xf32>
    %cst = arith.constant dense<0.000000e+00> : vector<8x128xf32>
    %6 = tpu.matmul %4, %5, %cst {dimension_numbers = #tpu.dot_dimension_numbers<[1], [0], [0], [1], [0, 0, 1, 1], [], []>} : vector<8x128xf32>, vector<128x128xf32>, vector<8x128xf32> -> vector<8x128xf32>
    %7 = arith.addf %3, %6 : vector<8x128xf32>
    %c0_6 = arith.constant 0 : index
    %c0_7 = arith.constant 0 : index
    %8 = vector.load %arg8[%c0_6, %c0_7] : memref<8x128xf32, #tpu.memory_space<vmem>>, vector<8x128xf32>
    tpu.vector_store %arg8[%c0_6, %c0_7], %7 {strides = array<i32>} : memref<8x128xf32, #tpu.memory_space<vmem>>, vector<8x128xf32>,
    %c0_i32_8 = arith.constant 0 : i32
    %9 = arith.cmpi eq, %arg2, %c0_i32_8 : i32
    %10 = arith.extui %9 : i1 to i32
    %c0_i32_9 = arith.constant 0 : i32
    %11 = arith.cmpi ne, %10, %c0_i32_9 : i32
    scf.if %11 {
      %c0_10 = arith.constant 0 : index
      %c0_11 = arith.constant 0 : index
      %12 = vector.load %arg8[%c0_10, %c0_11] : memref<8x128xf32, #tpu.memory_space<vmem>>, vector<8x128xf32>
      %c0_12 = arith.constant 0 : index
      %c0_13 = arith.constant 0 : index
      %13 = vector.load %arg5[%c0_12, %c0_13] : memref<1x128xf32, #tpu.memory_space<vmem>>, vector<1x128xf32>
      %14 = vector.broadcast %13 : vector<1x128xf32> to vector<8x128xf32>
      %15 = arith.mulf %12, %14 : vector<8x128xf32>
      %c0_14 = arith.constant 0 : index
      %c0_15 = arith.constant 0 : index
      %16 = vector.load %arg6[%c0_14, %c0_15] : memref<1x128xf32, #tpu.memory_space<vmem>>, vector<1x128xf32>
      %17 = vector.broadcast %16 : vector<1x128xf32> to vector<8x128xf32>
      %18 = arith.addf %15, %17 : vector<8x128xf32>
      %c0_16 = arith.constant 0 : index
      %c0_17 = arith.constant 0 : index
      %19 = vector.load %arg7[%c0_16, %c0_17] : memref<8x128xf32, #tpu.memory_space<vmem>>, vector<8x128xf32>
      tpu.vector_store %arg7[%c0_16, %c0_17], %18 {strides = array<i32>} : memref<8x128xf32, #tpu.memory_space<vmem>>, vector<8x128xf32>,
    } else {
    }
    return
  }
  func.func @transform_0(%arg0: i32, %arg1: i32, %arg2: i32) -> (i32, i32) {
    %c0_i32 = arith.constant 0 : i32
    return %arg0, %arg2 : i32, i32
  }
  func.func @transform_1(%arg0: i32, %arg1: i32, %arg2: i32) -> (i32, i32) {
    %c0_i32 = arith.constant 0 : i32
    return %arg2, %arg1 : i32, i32
  }
  func.func @transform_2(%arg0: i32, %arg1: i32, %arg2: i32) -> (i32, i32) {
    %c0_i32 = arith.constant 0 : i32
    %c0_i32_0 = arith.constant 0 : i32
    return %c0_i32, %arg1 : i32, i32
  }
  func.func @transform_3(%arg0: i32, %arg1: i32, %arg2: i32) -> (i32, i32) {
    %c0_i32 = arith.constant 0 : i32
    %c0_i32_0 = arith.constant 0 : i32
    return %c0_i32, %arg1 : i32, i32
  }
  func.func @transform_4(%arg0: i32, %arg1: i32, %arg2: i32) -> (i32, i32) {
    %c0_i32 = arith.constant 0 : i32
    return %arg0, %arg1 : i32, i32
  }
}

</mosaic_0001>

<bundles_post_ra>
// kernel: tpu_custom_call.1
= control target key start
LH: loop header
LB: loop body
LE: loop exit
PB: predicated region body
PF: predicated region fallthrough
CT: control target
= control target key end

     0   :  { %9 = vsyncpa [#allocation4], 0  ;;  %s416_s0 = inlined_call_operand.hbm [shape: f32[8,128], index: 0, kind: input, shape index: {}]   ;;  %s417_s1 = inlined_call_operand.hbm [shape: f32[128,128], index: 1, kind: input, shape index: {}]   ;;  %s418_s2 = inlined_call_operand.vmem [shape: f32[1,128], index: 2, kind: input, shape index: {}]   ;;  %s419_s3 = inlined_call_operand.vmem [shape: f32[1,128], index: 3, kind: input, shape index: {}]   ;;  %s420_s4 = inlined_call_operand.hbm [shape: f32[8,128], index: 4, kind: output, shape index: {}]  }
   0x1   :  { %10 = vsyncpa [#allocation7], 0 }
   0x2   :  { %11 = vsyncpa [#allocation5], 0  ;;  %s334_s15 = smov [#allocation3]   ;;  %s335_s17 = smov [#allocation6]  }
   0x3   :  { %s18_s16 = sshll.u32 %s334_s15, 4  ;;  %s27_s18 = sshll.u32 %s335_s17, 4  ;;  %s19_s16 = int_to_ptr.vmem [resolvable:$true] %s18_s16  ;;  %s367_s18 = int_to_ptr.vmem [resolvable:$true] %s27_s18 }
   0x4   :  { %s262_s21 = scalar_lea.hbm %s416_s0, 128 }
   0x5   :  { %p263_p0 = scmp.ne.s32.totalorder %s416_s0, %s262_s21  ;;  %p266_p1 = scmp.lt.u32.totalorder %s262_s21, %s416_s0 }
   0x7   :  { %p268_p2 = pnand %p266_p1, %p263_p0 }
   0x9   :  { %271 = shalt.err (!%p268_p2)
}
   0xa   :  { %s272_s26 = scalar_lea.vmem %s19_s16, 128  ;;  %p277_p4 = scmp.lt.s32.totalorder %s19_s16, %s19_s16 }
   0xb   :  { %p273_p3 = scmp.ne.s32.totalorder %s19_s16, %s272_s26  ;;  %p278_p5 = scmp.lt.s32.totalorder %s272_s26, %s272_s26 }
   0xd   :  { %p279_p6 = por %p278_p5, %p277_p4 }
   0xf   :  { %p280_p7 = pnand %p279_p6, %p273_p3 }
  0x11   :  { %283 = shalt.err (!%p280_p7)
}
  0x12   :  { %21 = dma.hbm_to_vmem [thread:$0]  %s416_s0, 128, %s19_s16, [#allocation4]  }
  0x13   :  { %s284_s5 = scalar_lea.hbm %s417_s1, 2048 }
  0x14   :  { %p285_p8 = scmp.ne.s32.totalorder %s417_s1, %s284_s5  ;;  %p288_p9 = scmp.lt.u32.totalorder %s284_s5, %s417_s1 }
  0x16   :  { %p290_p10 = pnand %p288_p9, %p285_p8 }
  0x18   :  { %293 = shalt.err (!%p290_p10)
}
  0x19   :  { %s294_s10 = scalar_lea.vmem %s367_s18, 2048  ;;  %p299_p12 = scmp.lt.s32.totalorder %s367_s18, %s367_s18 }
  0x1a   :  { %p295_p11 = scmp.ne.s32.totalorder %s367_s18, %s294_s10  ;;  %p300_p13 = scmp.lt.s32.totalorder %s294_s10, %s294_s10 }
  0x1c   :  { %p301_p0 = por %p300_p13, %p299_p12 }
  0x1e   :  { %p302_p1 = pnand %p301_p0, %p295_p11 }
  0x20   :  { %305 = shalt.err (!%p302_p1)
}
  0x21   :  { %s336_s0 = smov 128   ;;  %s337_s11 = smov 8  }
  0x22   :  { %33 = dma.hbm_to_vmem [thread:$0]  %s417_s1, 2048, %s367_s18, [#allocation7], %s336_s0, %s336_s0, %s337_s11  }
  0x23   :  { %328 = dma.done.wait [#allocation4], 128  }
  0x24   :  { %329 = vsyncadd [#allocation4], 4294967168 }
  0x25   :  { %330 = dma.done.wait [#allocation7], 2048  }
  0x26   :  { %331 = vsyncadd [#allocation7], 4294965248  ;;  %v338_v0 = vmov 0.0|0.0   ;;  %vm339_vm0 = vmmov 0   ;;  %v340_v1 = vmov 0.0   ;;  %v51_v2 = vld [vmem:[#allocation6] sm:$0xff] }
  0x27   :  { %230 = vmatprep.subr.bf16.mxu0 %v338_v0  ;;  %227 = vmatprep.mubr.msk.f32.mxu0 %vm339_vm0, %v340_v1  ;;  %v52_v3 = vld [vmem:[#allocation6 + $0x8] sm:$0xff]  ;;  %v53_v4 = vld [vmem:[#allocation6 + $0x10] sm:$0xff]  ;;  %v54_v6 = vld [vmem:[#allocation6 + $0x18] sm:$0xff]  ;;  %s341_s17 = smov [#allocation8]  }
  0x28   :  { %v231_v5 = vpack.c.bf16 %v52_v3, %v51_v2  ;;  %v234_v7 = vpack.c.bf16 %v54_v6, %v53_v4  ;;  %v55_v8 = vld [vmem:[#allocation6 + $0x20] sm:$0xff]  ;;  %v56_v9 = vld [vmem:[#allocation6 + $0x28] sm:$0xff]  ;;  %v57_v11 = vld [vmem:[#allocation6 + $0x30] sm:$0xff]  ;;  %s166_s18 = sshll.u32 %s341_s17, 4  ;;  %s167_s18 = int_to_ptr.vmem [resolvable:$true] %s166_s18 }
  0x29   :  { %v237_v10 = vpack.c.bf16 %v56_v9, %v55_v8  ;;  %v58_v12 = vld [vmem:[#allocation6 + $0x38] sm:$0xff]  ;;  %v59_v14 = vld [vmem:[#allocation6 + $0x40] sm:$0xff]  ;;  %v60_v15 = vld [vmem:[#allocation6 + $0x48] sm:$0xff]  ;;  %s306_s19 = scalar_lea.vmem %s167_s18, 128  ;;  %p311_p3 = scmp.lt.s32.totalorder %s167_s18, %s167_s18 }
  0x2a   :  { %232 = vmatpush3.bf16.msra.mxu0 %v231_v5  ;;  %v240_v13 = vpack.c.bf16 %v58_v12, %v57_v11  ;;  %v243_v16 = vpack.c.bf16 %v60_v15, %v59_v14  ;;  %v61_v17 = vld [vmem:[#allocation6 + $0x50] sm:$0xff]  ;;  %v62_v18 = vld [vmem:[#allocation6 + $0x58] sm:$0xff]  ;;  %v63_v20 = vld [vmem:[#allocation6 + $0x60] sm:$0xff]  ;;  %p307_p2 = scmp.ne.s32.totalorder %s167_s18, %s306_s19  ;;  %p312_p4 = scmp.lt.s32.totalorder %s306_s19, %s306_s19 }
  0x2b   :  { %233 = vmatprep.subr.bf16.mxu0 %v338_v0  ;;  %v246_v19 = vpack.c.bf16 %v62_v18, %v61_v17  ;;  %v64_v21 = vld [vmem:[#allocation6 + $0x68] sm:$0xff]  ;;  %v65_v23 = vld [vmem:[#allocation6 + $0x70] sm:$0xff]  ;;  %v66_v24 = vld [vmem:[#allocation6 + $0x78] sm:$0xff] }
  0x2c   :  { %v249_v22 = vpack.c.bf16 %v64_v21, %v63_v20  ;;  %v252_v25 = vpack.c.bf16 %v66_v24, %v65_v23  ;;  %v50_v26 = vld [vmem:[#allocation3] sm:$0xff]  ;;  %p313_p5 = por %p312_p4, %p311_p3 }
  0x2d   :  { %v176_v27 = vld [vmem:[%s418_s2] ss:$0 sm:$0xff] }
  0x2e   :  { %235 = vmatpush3.bf16.msra.mxu0 %v234_v7  ;;  %v177_v29 = vld [vmem:[%s419_s3] ss:$0 sm:$0xff]  ;;  %p314_p6 = pnand %p313_p5, %p307_p2 }
  0x2f   :  { %236 = vmatprep.subr.bf16.mxu0 %v338_v0 }
  0x32   :  { %238 = vmatpush3.bf16.msra.mxu0 %v237_v10 }
  0x33   :  { %239 = vmatprep.subr.bf16.mxu0 %v338_v0 }
  0x36   :  { %241 = vmatpush3.bf16.msra.mxu0 %v240_v13 }
  0x37   :  { %242 = vmatprep.subr.bf16.mxu0 %v338_v0 }
  0x3a   :  { %244 = vmatpush3.bf16.msra.mxu0 %v243_v16 }
  0x3b   :  { %245 = vmatprep.subr.bf16.mxu0 %v338_v0 }
  0x3e   :  { %247 = vmatpush3.bf16.msra.mxu0 %v246_v19 }
  0x3f   :  { %248 = vmatprep.subr.bf16.mxu0 %v338_v0 }
  0x42   :  { %250 = vmatpush3.bf16.msra.mxu0 %v249_v22 }
  0x43   :  { %251 = vmatprep.subr.bf16.mxu0 %v338_v0 }
  0x46   :  { %253 = vmatpush3.bf16.msra.mxu0 %v252_v25 }
  0x49   :  { %228 = vmatmul.mubr.f32.vlgmr.msra.gmra.mrb[0].mxu0 %v50_v26 }
 0x11c   :  { %v133_v28 = vpop.f32.mrb[0].mxu0 }
 0x11d   :  { %v150_v30 = vmul.f32 %v176_v27, %v133_v28  ;;  %v229_v31 = vpop.f32.mrb[1].mxu0 }
 0x11f   :  { %v158_v32 = vadd.f32 %v177_v29, %v150_v30 }
 0x121   :  { %159 = vst [vmem:[#allocation8] sm:$0xff] %v158_v32 }
 0x122   :  { %317 = shalt.err (!%p314_p6)
}
 0x123   :  { %s318_s21 = scalar_lea.hbm %s420_s4, 128 }
 0x124   :  { %p319_p7 = scmp.ne.s32.totalorder %s420_s4, %s318_s21  ;;  %p322_p8 = scmp.lt.u32.totalorder %s318_s21, %s420_s4 }
 0x126   :  { %p324_p9 = pnand %p322_p8, %p319_p7 }
 0x128   :  { %327 = shalt.err (!%p324_p9)
}
 0x129   :  { %169 = dma.vmem_to_hbm [thread:$0]  %s167_s18, 128, %s420_s4, [#allocation5]  }
 0x12a   :  { %332 = dma.done.wait [#allocation5], 128  }
 0x12b   :  { %333 = vsyncadd [#allocation5], 4294967168 }
 0x12c   :  { %173 = vsyncpa [#allocation4], 1 }
 0x12d   :  { %174 = vsyncpa [#allocation7], 1 }
 0x12e   :  { %175 = vsyncpa [#allocation5], 1 }

</bundles_post_ra>
